<compile_context>
chip_gen: v6e
topology: v6e:2x2x1
jax: 0.10.0
libtpu: 0.0.40
codegen_flags: <defaults>
</compile_context>

<pallas_src>
import functools
from math import ceil

import jax
import jax.numpy as jnp
from jax import lax
from jax.experimental import pallas as pl
from jax.experimental.pallas import tpu as pltpu


# ----------------------------------------------------------------------------
# VMEM budget per chip generation (v7x: 64 MiB physical, v5e/v6e: 128 MiB)
# ----------------------------------------------------------------------------
@functools.lru_cache(maxsize=1)
def _vmem_limit_bytes():
    try:
        info = pltpu.get_tpu_info()
        cap = None
        for name in ("vmem_capacity_bytes", "vmem_size_bytes", "vmem_bytes"):
            cap = getattr(info, name, None)
            if cap:
                break
        if cap:
            # ~3/4 of physical, capped at 100 MiB (v5e/v6e), floor 32 MiB.
            return max(32 << 20, min((int(cap) * 3) // 4, 100 << 20))
    except Exception:
        pass
    return 48 << 20          # conservative default (fits v7x's 64 MiB)


# ----------------------------------------------------------------------------
# Pallas kernels
# ----------------------------------------------------------------------------
def linear_kernel(x_ref, w_ref, o_ref):
    o_ref[...] = jnp.dot(x_ref[...], w_ref[...],
                         preferred_element_type=jnp.float32).astype(o_ref.dtype)


def linear_bias_kernel(x_ref, w_ref, b_ref, o_ref):
    acc = jnp.dot(x_ref[...], w_ref[...], preferred_element_type=jnp.float32)
    o_ref[...] = (acc + b_ref[...]).astype(o_ref.dtype)


def pallas_linear(x, w, bias=None, *, out_dtype=jnp.float32, block_rows=1024):
    """Row-tiled dense projection: out = x @ w (+ bias), f32 accumulate."""
    m, kdim = x.shape
    _, n = w.shape
    tm = min(block_rows, m)
    m_pad = -(-m // tm) * tm
    if m_pad != m:
        x = jnp.pad(x, ((0, m_pad - m), (0, 0)))
    in_specs = [pl.BlockSpec((tm, kdim), lambda i: (i, 0)),
                pl.BlockSpec((kdim, n), lambda i: (0, 0))]
    args = [x, w]
    kernel = linear_kernel
    if bias is not None:
        in_specs.append(pl.BlockSpec((1, n), lambda i: (0, 0)))
        args.append(bias.reshape(1, n).astype(jnp.float32))
        kernel = linear_bias_kernel
    out = pl.pallas_call(
        kernel,
        out_shape=jax.ShapeDtypeStruct((m_pad, n), out_dtype),
        grid=(m_pad // tm,),
        in_specs=in_specs,
        out_specs=pl.BlockSpec((tm, n), lambda i: (i, 0)),
        compiler_params=pltpu.CompilerParams(
            dimension_semantics=("parallel",),
            vmem_limit_bytes=_vmem_limit_bytes()),
    )(*args)
    return out[:m] if m_pad != m else out


def av_kernel(qls_ref, k_ref, v_ref, av_ref, *, heads, dim_head):
    """Pass 1 (per batch): av_h = softmax(q_land_scaled_h @ k_h^T) @ v_h per head.

    Full-sequence reduction over the keys; writes a lane-packed (m, heads*dh)
    av block.  Left-padded zero rows stay in as key columns (matches reference).
    """
    f32, bf16 = jnp.float32, jnp.bfloat16
    k = k_ref[...]                                   # (n_pad, inner) bf16
    v = v_ref[...]                                   # (n_pad, inner) bf16
    qls = qls_ref[...]                               # (m, inner) bf16, already * scale
    for hi in range(heads):
        sl = slice(hi * dim_head, (hi + 1) * dim_head)
        sim3 = lax.dot_general(qls[:, sl], k[:, sl],
                               (((1,), (1,)), ((), ())),
                               preferred_element_type=f32)        # (m, n_pad)
        attn3 = jax.nn.softmax(sim3, axis=-1)                     # f32
        av_ref[:, sl] = jnp.dot(attn3.astype(bf16), v[:, sl],
                                preferred_element_type=f32)


def nystrom_tile_kernel(q_ref, klbd_ref, zavbd_ref, vconv_ref, wlane_ref,
                        o_ref, attn_sc, *, heads, m_lm, tn, ksize):
    """Pass 2 (per batch x sequence tile):
         sim1 (one packed matmul) -> per-head softmax -> @ (z @ av) (one packed
         matmul) -> + residual depthwise conv (ksize shifted adds).
    Stores a single lane-dense (tn, heads*dim_head) block.
    """
    f32, bf16 = jnp.float32, jnp.bfloat16

    # sim1 for all heads at once: q (tn, inner) @ block-diag k_land_scaled^T
    sim1 = jnp.dot(q_ref[...], klbd_ref[...],
                   preferred_element_type=f32)                    # (tn, h*m)

    # per-head softmax written straight into the packed attn scratch
    for hi in range(heads):
        sl = slice(hi * m_lm, (hi + 1) * m_lm)
        attn_sc[:, sl] = jax.nn.softmax(sim1[:, sl], axis=-1).astype(bf16)

    # output path: attn1 @ (z @ av), all heads in one lane-dense matmul
    out = jnp.dot(attn_sc[...], zavbd_ref[...],
                  preferred_element_type=f32)                     # (tn, inner)

    # residual depthwise conv as ksize shifted adds (VPU) from the zero-padded
    # v buffer (resident per batch); conv(v)[i] = sum_t w[h,t] * v[i + t - pad].
    q0 = pl.multiple_of(pl.program_id(1) * tn, tn)
    wl = wlane_ref[...]                                           # (ksize, inner) f32
    for t in range(ksize):
        out = out + vconv_ref[pl.ds(q0 + t, tn), :].astype(f32) * wl[t:t + 1, :]

    o_ref[...] = out.astype(o_ref.dtype)


# ----------------------------------------------------------------------------
# Forward pass (Pallas kernels + tiny JAX glue for landmarks / pinv / packing)
# ----------------------------------------------------------------------------
def nystrom_attention_forward(x, params, cfg):
    b, n, dim = x.shape
    h, dh = cfg["heads"], cfg["dim_head"]
    m = cfg["num_landmarks"]
    iters = cfg["pinv_iterations"]
    ksize = cfg["residual_conv_kernel"]
    seq_block = cfg.get("seq_block", 512)
    scale = dh ** -0.5
    inner = h * dh
    f32, bf16 = jnp.float32, jnp.bfloat16
    HI = jax.lax.Precision.HIGHEST
    mm = functools.partial(jnp.matmul, precision=HI)
    vmem_limit = _vmem_limit_bytes()

    remainder = n % m
    if remainder > 0:
        x = jnp.pad(x, ((0, 0), (m - remainder, 0), (0, 0)))      # left-pad n
    n_pad = x.shape[1]
    l = ceil(n / m)                                               # n_pad == m * l

    # --- qkv projection (bias-free), bf16 outputs (halve HBM writeback) -----
    qkv = pallas_linear(x.reshape(b * n_pad, dim), params["w_qkv"], out_dtype=bf16)
    qkv = qkv.reshape(b, n_pad, 3 * inner)
    q, k, v = jnp.split(qkv, 3, axis=-1)           # (b, n_pad, inner) bf16 each

    # --- landmarks computed algebraically from x (projection has no bias, so
    #     group-averaging commutes with it): exact f32, no extra q/k sweep ----
    groups = jnp.arange(n_pad) // l
    G = (groups[None, :] == jnp.arange(m)[:, None]).astype(f32) / float(l)   # (m, n_pad)
    x_land = jnp.einsum("mn,bnd->bmd", G, x, precision=HI)                    # (b, m, dim)
    w_q = params["w_qkv"][:, :inner]
    w_k = params["w_qkv"][:, inner:2 * inner]
    q_land = mm(x_land, w_q) * scale               # (b, m, inner); scale folded (ref: q*scale)
    k_land = mm(x_land, w_k)                       # (b, m, inner); unscaled (ref)

    # --- tiny landmark math (sim2 / attn2 / Moore-Penrose) in f32, plain JAX -
    q_land_h = q_land.reshape(b, m, h, dh).transpose(0, 2, 1, 3)  # (b, h, m, dh)
    k_land_h = k_land.reshape(b, m, h, dh).transpose(0, 2, 1, 3)
    sim2 = jnp.einsum("bhid,bhjd->bhij", q_land_h, k_land_h, precision=HI)
    attn2 = jax.nn.softmax(sim2, axis=-1)
    abs_a2 = jnp.abs(attn2)
    denom = jnp.max(abs_a2.sum(-1)) * jnp.max(abs_a2.sum(-2))     # global max (matches torch)
    z = jnp.swapaxes(attn2, -1, -2) / denom
    eye = jnp.eye(m, dtype=f32)[None, None]
    for _ in range(iters):                                        # precision-sensitive: f32
        xz = mm(attn2, z)
        z = 0.25 * mm(z, 13.0 * eye - mm(xz, 15.0 * eye - mm(xz, 7.0 * eye - xz)))

    # --- pass 1: av = softmax(q_land_s @ k^T) @ v per head (full-seq reduce) -
    qkv_spec = pl.BlockSpec((pl.Squeezed(), n_pad, inner), lambda bi: (bi, 0, 0))
    land_spec = pl.BlockSpec((pl.Squeezed(), m, inner), lambda bi: (bi, 0, 0))
    av = pl.pallas_call(
        functools.partial(av_kernel, heads=h, dim_head=dh),
        out_shape=jax.ShapeDtypeStruct((b, m, inner), f32),
        grid=(b,),
        in_specs=[land_spec, qkv_spec, qkv_spec],
        out_specs=land_spec,
        compiler_params=pltpu.CompilerParams(
            dimension_semantics=("parallel",), vmem_limit_bytes=vmem_limit),
    )(q_land.astype(bf16), k, v)

    # --- pre-combine z @ av (exact by associativity), pack heads block-diag --
    av_h = av.reshape(b, m, h, dh).transpose(0, 2, 1, 3)          # (b, h, m, dh)
    zav = jnp.einsum("bhij,bhjd->bhid", z, av_h, precision=HI)    # (b, h, m, dh)

    hm = h * m
    k_land_s_h = k_land_h * scale          # scale folded here for sim1 (q stays unscaled)
    klbd = jnp.zeros((b, inner, hm), f32)  # block-diag k_land_scaled^T  (inner, h*m)
    zavbd = jnp.zeros((b, hm, inner), f32)  # block-diag z@av             (h*m, inner)
    for hi in range(h):
        klbd = klbd.at[:, hi * dh:(hi + 1) * dh, hi * m:(hi + 1) * m].set(
            jnp.swapaxes(k_land_s_h[:, hi], -1, -2))
        zavbd = zavbd.at[:, hi * m:(hi + 1) * m, hi * dh:(hi + 1) * dh].set(zav[:, hi])
    klbd = klbd.astype(bf16)
    zavbd = zavbd.astype(bf16)

    # --- sequence tiling for pass 2 ------------------------------------------
    pad_c = ksize // 2
    tn = min(seq_block, n_pad)
    if tn < n_pad:
        tn = max(8, (tn // 8) * 8)
    n_tiles = -(-n_pad // tn)
    n_pad2 = n_tiles * tn
    if n_pad2 != n_pad:                    # right-extend with zeros (rows discarded later)
        q = jnp.pad(q, ((0, 0), (0, n_pad2 - n_pad), (0, 0)))

    # zero-padded v buffer for the shifted-add conv (pad_c rows each side)
    n_conv_r = -(-(n_pad2 + 2 * pad_c) // 8) * 8
    v_conv = jnp.pad(v, ((0, 0), (pad_c, n_conv_r - n_pad - pad_c), (0, 0)))  # bf16
    # per-lane conv weights: wlane[t, hi*dh + d] = w_conv[hi, t]
    wlane = jnp.repeat(params["w_conv"].astype(f32).T, dh, axis=1)            # (ksize, inner)

    q_spec = pl.BlockSpec((pl.Squeezed(), tn, inner), lambda bi, ti: (bi, ti, 0))
    klbd_spec = pl.BlockSpec((pl.Squeezed(), inner, hm), lambda bi, ti: (bi, 0, 0))
    zavbd_spec = pl.BlockSpec((pl.Squeezed(), hm, inner), lambda bi, ti: (bi, 0, 0))
    vconv_spec = pl.BlockSpec((pl.Squeezed(), n_conv_r, inner), lambda bi, ti: (bi, 0, 0))
    wlane_spec = pl.BlockSpec((ksize, inner), lambda bi, ti: (0, 0))
    out_spec = pl.BlockSpec((pl.Squeezed(), tn, inner), lambda bi, ti: (bi, ti, 0))

    out = pl.pallas_call(
        functools.partial(nystrom_tile_kernel, heads=h, m_lm=m, tn=tn, ksize=ksize),
        out_shape=jax.ShapeDtypeStruct((b, n_pad2, inner), f32),
        grid=(b, n_tiles),
        in_specs=[q_spec, klbd_spec, zavbd_spec, vconv_spec, wlane_spec],
        out_specs=out_spec,
        scratch_shapes=[pltpu.VMEM((tn, hm), bf16)],
        compiler_params=pltpu.CompilerParams(
            dimension_semantics=("parallel", "parallel"),
            vmem_limit_bytes=vmem_limit),
    )(q, klbd, zavbd, v_conv, wlane)

    # --- output projection with fused bias -----------------------------------
    out = pallas_linear(out.reshape(b * n_pad2, inner), params["w_out"],
                        bias=params["b_out"], out_dtype=f32)
    out = out.reshape(b, n_pad2, dim)
    # TODO(synk): dropout is p=0.0 (identity) and the optional mask path is not
    # exercised; the outer Nystromformer wrapper (PreNorm LayerNorm / FeedForward /
    # depth residuals) is standard dense glue outside this attention kernel.
    return out[:, n_pad - n:n_pad]


# ----------------------------------------------------------------------------
# Pure-JAX reference (mirrors the PyTorch forward exactly)
# ----------------------------------------------------------------------------
def reference_forward(x, params, cfg):
    P = jax.lax.Precision.HIGHEST
    mm = functools.partial(jnp.matmul, precision=P)
    b, n, dim = x.shape
    h, dh = cfg["heads"], cfg["dim_head"]
    m = cfg["num_landmarks"]
    iters = cfg["pinv_iterations"]
    ksize = cfg["residual_conv_kernel"]
    scale = dh ** -0.5
    inner = h * dh

    rem = n % m
    if rem > 0:
        x = jnp.pad(x, ((0, 0), (m - rem, 0), (0, 0)))
    n_pad = x.shape[1]
    qkv = mm(x, params["w_qkv"])
    q, k, v = jnp.split(qkv, 3, axis=-1)

    def th(t):
        return t.reshape(b, n_pad, h, dh).transpose(0, 2, 1, 3)

    q, k, v = th(q), th(k), th(v)
    q = q * scale
    l = ceil(n / m)
    q_land = q.reshape(b, h, m, l, dh).sum(3) / l
    k_land = k.reshape(b, h, m, l, dh).sum(3) / l
    sim1 = jnp.einsum("bhid,bhjd->bhij", q, k_land, precision=P)
    sim2 = jnp.einsum("bhid,bhjd->bhij", q_land, k_land, precision=P)
    sim3 = jnp.einsum("bhid,bhjd->bhij", q_land, k, precision=P)
    attn1 = jax.nn.softmax(sim1, -1)
    attn2 = jax.nn.softmax(sim2, -1)
    attn3 = jax.nn.softmax(sim3, -1)

    ax = jnp.abs(attn2)
    z = jnp.swapaxes(attn2, -1, -2) / (jnp.max(ax.sum(-1)) * jnp.max(ax.sum(-2)))
    eye = jnp.eye(m)[None, None]
    for _ in range(iters):
        xz = mm(attn2, z)
        z = 0.25 * mm(z, 13 * eye - mm(xz, 15 * eye - mm(xz, 7 * eye - xz)))
    out = mm(mm(attn1, z), mm(attn3, v))

    pad = ksize // 2
    vp = jnp.pad(v, ((0, 0), (0, 0), (pad, pad), (0, 0)))
    wc = params["w_conv"]
    conv = sum(wc[None, :, t, None, None] * vp[:, :, t:t + n_pad, :]
               for t in range(ksize))
    out = out + conv

    out = out.transpose(0, 2, 1, 3).reshape(b, n_pad, inner)
    out = mm(out, params["w_out"]) + params["b_out"]
    return out[:, -n:]


# ----------------------------------------------------------------------------
# Main
# ----------------------------------------------------------------------------
if __name__ == "__main__":
    cfg = dict(
        dim=32,
        heads=4,
        dim_head=16,
        num_landmarks=8,
        pinv_iterations=6,
        residual_conv_kernel=5,
        seq_block=8,          # small tile so the sequence-tiled path is exercised
    )
    b, n = 2, 20   # n % num_landmarks != 0 -> exercises the left-padding path
    dim = cfg["dim"]
    inner = cfg["heads"] * cfg["dim_head"]

    key = jax.random.PRNGKey(0)
    kx, kqkv, kout, kbias, kconv = jax.random.split(key, 5)
    x = jax.random.normal(kx, (b, n, dim), dtype=jnp.float32)
    params = {
        "w_qkv": jax.random.normal(kqkv, (dim, 3 * inner), jnp.float32) / jnp.sqrt(dim),
        "w_out": jax.random.normal(kout, (inner, dim), jnp.float32) / jnp.sqrt(inner),
        "b_out": jax.random.normal(kbias, (dim,), jnp.float32) * 0.1,
        "w_conv": jax.random.normal(kconv, (cfg["heads"], cfg["residual_conv_kernel"]),
                                    jnp.float32) * 0.1,
    }

    out = nystrom_attention_forward(x, params, cfg)
    out = jax.block_until_ready(out)

    ref = reference_forward(x, params, cfg)
    ref = jax.block_until_ready(ref)

    assert out.shape == (b, n, dim), out.shape
    assert bool(jnp.all(jnp.isfinite(out)))
    # combined abs/rel tolerance (bf16 MXU operands on the wide matmuls)
    max_err = float(jnp.max(jnp.abs(out - ref) / (1.0 + jnp.abs(ref))))
    assert max_err < 5e-2, f"mismatch vs reference: {max_err}"

    print("KERNEL_OK")
</pallas_src>

<mosaic_0001>
module attributes {stable_mosaic.version = 11 : i64} {
  func.func @linear_kernel(%arg0: i32, %arg1: memref<48x32xf32, #tpu.memory_space<vmem>>, %arg2: memref<32x192xf32, #tpu.memory_space<vmem>>, %arg3: memref<48x192xbf16, #tpu.memory_space<vmem>>) attributes {dimension_semantics = [#tpu.dimension_semantics<parallel>], iteration_bounds = array<i64: 1>, scalar_prefetch = 0 : i64, scratch_operands = 0 : i64, tpu.core_type = #tpu.core_type<tc>, window_params = [{transform_indices = @transform_0, window_bounds = array<i64: 48, 32>}, {pipeline_mode = #tpu.pipeline_mode<synchronous>, transform_indices = @transform_1, window_bounds = array<i64: 32, 192>}, {transform_indices = @transform_2, window_bounds = array<i64: 48, 192>}]} {
    %c0 = arith.constant 0 : index
    %c0_0 = arith.constant 0 : index
    %0 = vector.load %arg1[%c0, %c0_0] : memref<48x32xf32, #tpu.memory_space<vmem>>, vector<48x32xf32>
    %c0_1 = arith.constant 0 : index
    %c0_2 = arith.constant 0 : index
    %1 = vector.load %arg2[%c0_1, %c0_2] : memref<32x192xf32, #tpu.memory_space<vmem>>, vector<32x192xf32>
    %cst = arith.constant dense<0.000000e+00> : vector<48x192xf32>
    %2 = tpu.matmul %0, %1, %cst {dimension_numbers = #tpu.dot_dimension_numbers<[1], [0], [0], [1], [0, 0, 1, 1], [], []>} : vector<48x32xf32>, vector<32x192xf32>, vector<48x192xf32> -> vector<48x192xf32>
    %3 = arith.truncf %2 : vector<48x192xf32> to vector<48x192xbf16>
    %c0_3 = arith.constant 0 : index
    %c0_4 = arith.constant 0 : index
    %4 = vector.load %arg3[%c0_3, %c0_4] : memref<48x192xbf16, #tpu.memory_space<vmem>>, vector<48x192xbf16>
    tpu.vector_store %arg3[%c0_3, %c0_4], %3 {strides = array<i32>} : memref<48x192xbf16, #tpu.memory_space<vmem>>, vector<48x192xbf16>,
    return
  }
  func.func @transform_0(%arg0: i32) -> (i32, i32) {
    %c0_i32 = arith.constant 0 : i32
    %c0_i32_0 = arith.constant 0 : i32
    return %arg0, %c0_i32 : i32, i32
  }
  func.func @transform_1(%arg0: i32) -> (i32, i32) {
    %c0_i32 = arith.constant 0 : i32
    %c0_i32_0 = arith.constant 0 : i32
    %c0_i32_1 = arith.constant 0 : i32
    return %c0_i32, %c0_i32_0 : i32, i32
  }
  func.func @transform_2(%arg0: i32) -> (i32, i32) {
    %c0_i32 = arith.constant 0 : i32
    %c0_i32_0 = arith.constant 0 : i32
    return %arg0, %c0_i32 : i32, i32
  }
}

</mosaic_0001>

<bundles_post_ra>
// kernel: tpu_custom_call.1
= control target key start
LH: loop header
LB: loop body
LE: loop exit
PB: predicated region body
PF: predicated region fallthrough
CT: control target
= control target key end

     0   :  { %s345_s0 = inlined_call_operand.vmem [shape: f32[48,32], index: 0, kind: input, shape index: {}]   ;;  %s346_s1 = inlined_call_operand.vmem [shape: f32[32,192], index: 1, kind: input, shape index: {}]   ;;  %s347_s2 = inlined_call_operand.hbm [shape: bf16[48,192], index: 2, kind: output, shape index: {}]  }
   0x1   :  { %v25_v0 = vld [vmem:[%s346_s1 + $0x38] sm:$0xff]  ;;  %v24_v1 = vld [vmem:[%s346_s1 + $0x30] sm:$0xff]  ;;  %v23_v2 = vld [vmem:[%s346_s1 + $0x28] sm:$0xff] }
   0x2   :  { %69 = vmatprep.subr.mxu0 %v25_v0  ;;  %225 = vmatprep.subr.mxu1 %v25_v0  ;;  %v22_v3 = vld [vmem:[%s346_s1 + $0x20] sm:$0xff]  ;;  %v21_v4 = vld [vmem:[%s346_s1 + $0x18] sm:$0xff]  ;;  %v20_v5 = vld [vmem:[%s346_s1 + $0x10] sm:$0xff] }
   0x3   :  { %70 = vmatpush1.msra.mxu0 %v24_v1  ;;  %229 = vmatpush1.msra.mxu1 %v24_v1  ;;  %v19_v6 = vld [vmem:[%s346_s1 + $0x8] sm:$0xff] }
   0x4   :  { %71 = vmatprep.subr.mxu0 %v23_v2  ;;  %226 = vmatprep.subr.mxu1 %v23_v2 }
   0x5   :  { %72 = vmatpush1.msra.mxu0 %v22_v3  ;;  %230 = vmatpush1.msra.mxu1 %v22_v3 }
   0x6   :  { %7 = vsyncpa [#allocation3], 0  ;;  %73 = vmatprep.subr.mxu0 %v21_v4  ;;  %227 = vmatprep.subr.mxu1 %v21_v4  ;;  %v18_v7 = vld [vmem:[%s346_s1] sm:$0xff]  ;;  %vm26_vm0 = vcmask 261120   ;;  %v15_v9 = vld [vmem:[%s345_s0 + $0x18] sm:$0xff]  ;;  %v259_v10 = vmov 0.0  }
   0x7   :  { %74 = vmatpush1.msra.mxu0 %v20_v5  ;;  %231 = vmatpush1.msra.mxu1 %v20_v5  ;;  %v12_v8 = vld [vmem:[%s345_s0] sm:$0xff]  ;;  %v13_v11 = vld [vmem:[%s345_s0 + $0x8] sm:$0xff]  ;;  %v14_v13 = vld [vmem:[%s345_s0 + $0x10] sm:$0xff]  ;;  %vm182_vm1 = vcmask 1043456   ;;  %vm183_vm2 = vcmask 523268  }
   0x8   :  { %75 = vmatprep.subr.mxu0 %v19_v6  ;;  %228 = vmatprep.subr.mxu1 %v19_v6  ;;  %v16_v12 = vld [vmem:[%s345_s0 + $0x20] sm:$0xff]  ;;  %v17_v14 = vld [vmem:[%s345_s0 + $0x28] sm:$0xff]  ;;  %vm326_vm3 = vmor %vm183_vm2, %vm182_vm1  ;;  %s260_s0 = smov [#allocation2]  }
   0x9   :  { %76 = vmatpush1.msra.mxu0 %v18_v7  ;;  %232 = vmatpush1.msra.mxu1 %v18_v7  ;;  %s196_s8 = sshll.u32 %s260_s0, 4  ;;  %s197_s8 = int_to_ptr.vmem [resolvable:$true] %s196_s8 }
   0xa   :  { %109 = vmatprep.mubr.f32.mxu0 %v259_v10  ;;  %127 = vmatprep.mubr.f32.mxu1 %v259_v10  ;;  %s237_s9 = scalar_lea.vmem %s197_s8, 768  ;;  %p242_p1 = scmp.lt.s32.totalorder %s197_s8, %s197_s8 }
   0xb   :  { %207 = vmatmul.mubr.msk.f32.vlgmr.msra.gmra.mxu0 %vm26_vm0, %v12_v8  ;;  %210 = vmatmul.mubr.msk.f32.vlgmr.msra.gmra.mxu1 %vm26_vm0, %v15_v9  ;;  %p238_p0 = scmp.ne.s32.totalorder %s197_s8, %s237_s9  ;;  %p243_p2 = scmp.lt.s32.totalorder %s237_s9, %s237_s9 }
   0xc   :  { %115 = vmatprep.mubr.f32.mxu0 %v259_v10  ;;  %133 = vmatprep.mubr.f32.mxu1 %v259_v10 }
   0xd   :  { %p244_p3 = por %p243_p2, %p242_p1 }
   0xf   :  { %208 = vmatmul.mubr.msk.f32.gmra.mxu0 %vm26_vm0, %v13_v11  ;;  %211 = vmatmul.mubr.msk.f32.gmra.mxu1 %vm26_vm0, %v16_v12  ;;  %p245_p4 = pnand %p244_p3, %p238_p0 }
  0x10   :  { %121 = vmatprep.mubr.f32.mxu0 %v259_v10  ;;  %139 = vmatprep.mubr.f32.mxu1 %v259_v10 }
  0x13   :  { %209 = vmatmul.mubr.msk.f32.gmra.mxu0 %vm26_vm0, %v14_v13  ;;  %212 = vmatmul.mubr.msk.f32.gmra.mxu1 %vm26_vm0, %v17_v14 }
  0xcb   :  { %v111_v15 = vpop.f32.mrf.mxu0  ;;  %v129_v16 = vpop.f32.mrf.mxu1 }
  0xcd   :  { %v113_v17 = vpop.f32.mrf.mxu0  ;;  %v131_v19 = vpop.f32.mrf.mxu1 }
  0xce   :  { %v219_v20 = vpack.c.bf16 %v113_v17, %v111_v15  ;;  %v222_v21 = vpack.c.bf16 %v131_v19, %v129_v16 }
  0xcf   :  { %v117_v22 = vpop.f32.mrf.mxu0  ;;  %v135_v23 = vpop.f32.mrf.mxu1 }
  0xd0   :  { %185 = vst.msk [vmem:[#allocation2] sm:$0xff] %vm326_vm3, %v219_v20  ;;  %188 = vst.msk [vmem:[#allocation2 + $0x18] sm:$0xff] %vm326_vm3, %v222_v21 }
  0xd1   :  { %v119_v24 = vpop.f32.mrf.mxu0  ;;  %v137_v25 = vpop.f32.mrf.mxu1 }
  0xd2   :  { %v220_v26 = vpack.c.bf16 %v119_v24, %v117_v22  ;;  %v223_v27 = vpack.c.bf16 %v137_v25, %v135_v23 }
  0xd3   :  { %v123_v28 = vpop.f32.mrf.mxu0  ;;  %v141_v29 = vpop.f32.mrf.mxu1 }
  0xd4   :  { %186 = vst.msk [vmem:[#allocation2 + $0x8] sm:$0xff] %vm326_vm3, %v220_v26  ;;  %189 = vst.msk [vmem:[#allocation2 + $0x20] sm:$0xff] %vm326_vm3, %v223_v27 }
  0xd5   :  { %v125_v30 = vpop.f32.mrf.mxu0  ;;  %v143_v31 = vpop.f32.mrf.mxu1 }
  0xd6   :  { %v221_v32 = vpack.c.bf16 %v125_v30, %v123_v28  ;;  %v224_v33 = vpack.c.bf16 %v143_v31, %v141_v29 }
  0xd8   :  { %187 = vst.msk [vmem:[#allocation2 + $0x10] sm:$0xff] %vm326_vm3, %v221_v32  ;;  %190 = vst.msk [vmem:[#allocation2 + $0x28] sm:$0xff] %vm326_vm3, %v224_v33 }
  0xd9   :  { %248 = shalt.err (!%p245_p4)
}
  0xda   :  { %s261_s10 = smov 128   ;;  %s262_s11 = smov 8  }
  0xdb   :  { %202 = dma.vmem_to_hbm [thread:$0]  %s197_s8, 768, %s347_s2, [#allocation3], %s261_s10, %s261_s10, %s262_s11  }
  0xdc   :  { %257 = dma.done.wait [#allocation3], 768  }
  0xdd   :  { %258 = vsyncadd [#allocation3], 4294966528 }
  0xde   :  { %206 = vsyncpa [#allocation3], 1 }

</bundles_post_ra>
